<compile_context>
chip_gen: v7x
topology: tpu7x:2x2x1
jax: 0.10.0
libtpu: 0.0.40
codegen_flags: <defaults>
</compile_context>

<pallas_src>
import functools

import jax
import jax.numpy as jnp
from jax.experimental import pallas as pl
from jax.experimental.pallas import tpu as pltpu


# ---------------------------------------------------------------------------
# DDPM schedules (plain JAX glue, mirrors ddpm_schedules in the PyTorch code)
# ---------------------------------------------------------------------------
def ddpm_schedules(beta1, beta2, T):
    assert beta1 < beta2 < 1.0
    beta_t = (beta2 - beta1) * jnp.arange(0, T + 1, dtype=jnp.float32) / T + beta1
    alpha_t = 1.0 - beta_t
    log_alpha_t = jnp.log(alpha_t)
    alphabar_t = jnp.exp(jnp.cumsum(log_alpha_t))
    sqrtab = jnp.sqrt(alphabar_t)
    sqrtmab = jnp.sqrt(1.0 - alphabar_t)
    return sqrtab, sqrtmab


def _round_up(n, m):
    return ((n + m - 1) // m) * m


def _cdiv(a, b):
    return -(-a // b)


# ---------------------------------------------------------------------------
# Pallas kernel (feature-major: features on sublanes, batch on lanes)
# ---------------------------------------------------------------------------
def _softplus100(x):
    # torch.nn.Softplus(beta=100) with default threshold=20:
    #   y = x                     if 100*x > 20
    #     = log1p(exp(100*x))/100 otherwise
    bx = 100.0 * x
    safe = jnp.minimum(bx, 20.0)  # avoid overflow in the unused branch
    return jnp.where(bx > 20.0, x, jnp.log1p(jnp.exp(safe)) / 100.0)


def ddpm_loss_kernel(
    data_ref,                                   # packed per-sample inputs (F, TB)
    pw1_ref, cw1_ref, tw1_ref, b1_ref,          # fused embedding, first layer
    w2_ref, b2_ref,                             # fused (block-diag) second layer
    lw0_ref, lb0_ref, lw1_ref, lb1_ref, lw2_ref, lb2_ref,  # MLP head
    loss_ref,
    *, data_dim, hid_dim, emb_dim,
):
    f32 = jnp.float32
    D, H, E = data_dim, hid_dim, emb_dim

    d = data_ref[...]                           # (F, TB), batch on lanes
    o = 0
    x = d[o:o + D, :]; o += D                   # rows 0:4
    noise = d[o:o + D, :]; o += D               # rows 4:8
    h = d[o:o + H, :]; o += H                   # rows 8:16 (8-sublane aligned)
    t = d[o:o + 1, :]; o += 1                   # row 16
    cmask = d[o:o + 1, :]; o += 1               # row 17
    ab = d[o:o + 1, :]; o += 1                  # row 18  (sqrtab[t])
    mab = d[o:o + 1, :]                         # row 19  (sqrtmab[t])

    def mm(w_ref, v):
        # y = W @ X on the MXU, f32 accumulation.
        return jnp.dot(w_ref[...], v, preferred_element_type=f32)

    # x_t = sqrtab[_ts]*x + sqrtmab[_ts]*noise ; (1,TB) rows broadcast over sublanes
    x_t = ab * x + mab * noise
    # context mask: h * (-1 * (1 - m)) == h * (m - 1)   (single VPU op)
    h_m = h * (cmask - 1.0)

    # --- fused embeddings -------------------------------------------------
    # First layers: two tiny matmuls + a K=1 VPU outer product for time.
    p1 = mm(pw1_ref, x_t)                       # (E, TB)  pointembed L1
    c1 = mm(cw1_ref, h_m)                       # (E, TB)  contextembed L1
    t1 = tw1_ref[...] * t                       # (E,1)*(1,TB) -> (E,TB) timeembed L1
    # Stack (32-row aligned) -> one dense (3E, TB) tile for bias/softplus/L2.
    e = jnp.concatenate([p1, c1, t1], axis=0) + b1_ref[...]
    e = _softplus100(e)
    # Block-diagonal second embedding linear for all three branches at once.
    e = mm(w2_ref, e) + b2_ref[...]             # (3E, TB)
    xemb = e[0:E, :]
    hemb = e[E:2 * E, :]
    temb = e[2 * E:3 * E, :]

    # --- MLP head ----------------------------------------------------------
    z = hemb * xemb + temb                      # (E, TB)
    z = _softplus100(mm(lw0_ref, z) + lb0_ref[...])
    z = _softplus100(mm(lw1_ref, z) + lb1_ref[...])
    pred = mm(lw2_ref, z) + lb2_ref[...]        # (D, TB)

    # MSELoss(reduction='none')(noise, pred).sum(-1): sublane-reduce the D=4
    # rows into one lane-dense (1, TB) row -> single unmasked vector store.
    diff = noise - pred
    loss_ref[...] = jnp.sum(diff * diff, axis=0, keepdims=True)


def ddpm_forward_pallas(x, h, noise, t_norm, cmask, ab, mab, kparams,
                        *, block_b=1024, min_grid_blocks=2):
    """All per-sample inputs are (B, k) float32; returns per-sample loss (B,)."""
    B, D = x.shape
    H = h.shape[1]
    E = kparams[0].shape[0]                     # pw1 is (E, D)

    # Pack the 7 narrow per-sample tensors into one feature-major (F, B) array.
    # Row layout: [x(0:D) | noise(D:2D) | h(2D:2D+H) | t | cmask | sqrtab | sqrtmab]
    data = jnp.concatenate([x, noise, h, t_norm, cmask, ab, mab], axis=1).T
    F = data.shape[0]

    # Batch tiling: lanes carry batch -> tile must be a multiple of 128.
    # Use big tiles (block_b) to amortize per-grid-step overhead, but keep
    # >= min_grid_blocks blocks when possible so v7x megacore has work for
    # both TensorCores ("parallel" batch axis).
    b128 = _round_up(B, 128)
    nb = _cdiv(b128, block_b)
    if min_grid_blocks > 1:
        nb = max(nb, min(min_grid_blocks, b128 // 128))
    tb = _round_up(_cdiv(b128, nb), 128)
    nb = _cdiv(b128, tb)
    b_pad = nb * tb
    if b_pad > B:
        data = jnp.pad(data, ((0, 0), (0, b_pad - B)))

    # One packed per-sample input block per grid step (double-buffered DMA).
    data_spec = pl.BlockSpec((F, tb), lambda i: (0, i))
    # Weights / biases: full blocks with constant index_map -> VMEM-resident
    # across grid steps (no re-DMA).
    weight_specs = [pl.BlockSpec(w.shape, lambda i: (0, 0)) for w in kparams]

    kern = functools.partial(ddpm_loss_kernel, data_dim=D, hid_dim=H, emb_dim=E)
    loss = pl.pallas_call(
        kern,
        out_shape=jax.ShapeDtypeStruct((nb, tb), jnp.float32),
        grid=(nb,),
        in_specs=[data_spec] + weight_specs,
        out_specs=pl.BlockSpec((1, tb), lambda i: (i, 0)),
        compiler_params=pltpu.CompilerParams(
            dimension_semantics=("parallel",)),  # megacore sharding on v7x
    )(data, *kparams)
    # Padded rows hold garbage loss; slice them off.
    return loss.reshape(b_pad)[:B]


# ---------------------------------------------------------------------------
# Parameters: PyTorch orientation (out, in) weights / (out,) biases, plus a
# packer that builds the fused/block-diagonal kernel layout.
# ---------------------------------------------------------------------------
def make_params(key, data_dim, hid_dim, input_dim, mlp_dims):
    keys = jax.random.split(key, 18)
    ki = iter(keys)

    def lin(out_d, in_d):
        w = 0.1 * jax.random.normal(next(ki), (out_d, in_d), jnp.float32)
        b = 0.05 * jax.random.normal(next(ki), (out_d,), jnp.float32)
        return w, b

    pw1, pb1 = lin(input_dim, data_dim)         # pointembed
    pw2, pb2 = lin(input_dim, input_dim)
    cw1, cb1 = lin(input_dim, hid_dim)          # contextembed
    cw2, cb2 = lin(input_dim, input_dim)
    tw1, tb1 = lin(input_dim, 1)                # timeembed
    tw2, tb2 = lin(input_dim, input_dim)
    dims_in = (input_dim,) + mlp_dims           # MLP head
    dims_out = mlp_dims + (data_dim,)
    head = []
    for din, dout in zip(dims_in, dims_out):
        head.extend(lin(dout, din))
    lw0, lb0, lw1, lb1, lw2, lb2 = head
    return (pw1, pb1, pw2, pb2, cw1, cb1, cw2, cb2, tw1, tb1, tw2, tb2,
            lw0, lb0, lw1, lb1, lw2, lb2)


def _block_diag(*ms):
    rows = sum(m.shape[0] for m in ms)
    cols = sum(m.shape[1] for m in ms)
    out = jnp.zeros((rows, cols), ms[0].dtype)
    r = c = 0
    for m in ms:
        out = out.at[r:r + m.shape[0], c:c + m.shape[1]].set(m)
        r += m.shape[0]
        c += m.shape[1]
    return out


def pack_params_for_kernel(params):
    (pw1, pb1, pw2, pb2, cw1, cb1, cw2, cb2, tw1, tb1, tw2, tb2,
     lw0, lb0, lw1, lb1, lw2, lb2) = params

    def col(b):
        return b.reshape(-1, 1)

    b1f = jnp.concatenate([col(pb1), col(cb1), col(tb1)], axis=0)   # (3E, 1)
    w2f = _block_diag(pw2, cw2, tw2)                                # (3E, 3E)
    b2f = jnp.concatenate([col(pb2), col(cb2), col(tb2)], axis=0)   # (3E, 1)
    return (pw1, cw1, tw1, b1f, w2f, b2f,
            lw0, col(lb0), lw1, col(lb1), lw2, col(lb2))


# ---------------------------------------------------------------------------
# Pure-JAX reference (batch-major, unfused weights) for correctness checks
# ---------------------------------------------------------------------------
def ddpm_forward_ref(x, h, noise, t_norm, cmask, ab, mab, params):
    (pw1, pb1, pw2, pb2, cw1, cb1, cw2, cb2, tw1, tb1, tw2, tb2,
     lw0, lb0, lw1, lb1, lw2, lb2) = params

    def sp(v):
        bv = 100.0 * v
        return jnp.where(bv > 20.0, v,
                         jnp.log1p(jnp.exp(jnp.minimum(bv, 20.0))) / 100.0)

    def emb(v, w1, b1, w2, b2):
        return sp(v @ w1.T + b1) @ w2.T + b2

    x_t = ab * x + mab * noise
    xe = emb(x_t, pw1, pb1, pw2, pb2)
    hm = h * (-1.0 * (1.0 - cmask))
    he = emb(hm, cw1, cb1, cw2, cb2)
    te = emb(t_norm, tw1, tb1, tw2, tb2)
    z = he * xe + te
    z = sp(z @ lw0.T + lb0)
    z = sp(z @ lw1.T + lb1)
    pred = z @ lw2.T + lb2
    return jnp.sum((noise - pred) ** 2, axis=-1)


# ---------------------------------------------------------------------------
if __name__ == "__main__":
    config = dict(
        data_dim=4, hid_dim=8, input_dim=32, mlp_dims=(32, 32),
        beta1=1e-4, beta2=0.02, n_T=100, drop_prob=0.1,
    )

    sqrtab, sqrtmab = ddpm_schedules(config["beta1"], config["beta2"], config["n_T"])

    def make_inputs(key, B):
        # TODO(synk): randomness (t, noise, bernoulli context-mask) is sampled
        # here with jax.random instead of inside the kernel, matching the
        # PyTorch training-forward semantics.
        kx, kh, kt, kn, km = jax.random.split(key, 5)
        x = jax.random.normal(kx, (B, config["data_dim"]), jnp.float32)
        h = jax.random.normal(kh, (B, config["hid_dim"]), jnp.float32)
        _ts = jax.random.randint(kt, (B,), 1, config["n_T"] + 1)
        noise = jax.random.normal(kn, x.shape, jnp.float32)
        cmask = jax.random.bernoulli(km, config["drop_prob"], (B, 1)).astype(jnp.float32)
        ab = sqrtab[_ts][:, None]
        mab = sqrtmab[_ts][:, None]
        t_norm = (_ts.astype(jnp.float32) / config["n_T"])[:, None]
        return x, h, noise, t_norm, cmask, ab, mab

    key = jax.random.PRNGKey(0)
    kp, k1, k2 = jax.random.split(key, 3)
    params = make_params(kp, config["data_dim"], config["hid_dim"],
                         config["input_dim"], config["mlp_dims"])
    kparams = pack_params_for_kernel(params)

    # 1) Small batch (module's toy size): single 128-lane tile.
    inp = make_inputs(k1, 8)
    loss = ddpm_forward_pallas(*inp, kparams)
    jax.block_until_ready(loss)
    ref = ddpm_forward_ref(*inp, params)
    assert loss.shape == (8,)
    assert jnp.allclose(loss, ref, rtol=1e-4, atol=1e-4), (loss, ref)

    # 2) Larger batch exercising a multi-block grid (2 x 256-lane tiles) + padding.
    inp2 = make_inputs(k2, 500)
    loss2 = ddpm_forward_pallas(*inp2, kparams)
    jax.block_until_ready(loss2)
    ref2 = ddpm_forward_ref(*inp2, params)
    assert loss2.shape == (500,)
    assert jnp.allclose(loss2, ref2, rtol=1e-4, atol=1e-4)

    print("KERNEL_OK")
</pallas_src>

<mosaic_0001>
module attributes {stable_mosaic.version = 11 : i64} {
  func.func @ddpm_loss_kernel(%arg0: i32, %arg1: memref<20x128xf32, #tpu.memory_space<vmem>>, %arg2: memref<32x4xf32, #tpu.memory_space<vmem>>, %arg3: memref<32x8xf32, #tpu.memory_space<vmem>>, %arg4: memref<32x1xf32, #tpu.memory_space<vmem>>, %arg5: memref<96x1xf32, #tpu.memory_space<vmem>>, %arg6: memref<96x96xf32, #tpu.memory_space<vmem>>, %arg7: memref<96x1xf32, #tpu.memory_space<vmem>>, %arg8: memref<32x32xf32, #tpu.memory_space<vmem>>, %arg9: memref<32x1xf32, #tpu.memory_space<vmem>>, %arg10: memref<32x32xf32, #tpu.memory_space<vmem>>, %arg11: memref<32x1xf32, #tpu.memory_space<vmem>>, %arg12: memref<4x32xf32, #tpu.memory_space<vmem>>, %arg13: memref<4x1xf32, #tpu.memory_space<vmem>>, %arg14: memref<1x128xf32, #tpu.memory_space<vmem>>) attributes {dimension_semantics = [#tpu.dimension_semantics<parallel>], iteration_bounds = array<i64: 1>, scalar_prefetch = 0 : i64, scratch_operands = 0 : i64, tpu.core_type = #tpu.core_type<tc>, window_params = [{transform_indices = @transform_0, window_bounds = array<i64: 20, 128>}, {pipeline_mode = #tpu.pipeline_mode<synchronous>, transform_indices = @transform_1, window_bounds = array<i64: 32, 4>}, {pipeline_mode = #tpu.pipeline_mode<synchronous>, transform_indices = @transform_2, window_bounds = array<i64: 32, 8>}, {pipeline_mode = #tpu.pipeline_mode<synchronous>, transform_indices = @transform_3, window_bounds = array<i64: 32, 1>}, {pipeline_mode = #tpu.pipeline_mode<synchronous>, transform_indices = @transform_4, window_bounds = array<i64: 96, 1>}, {pipeline_mode = #tpu.pipeline_mode<synchronous>, transform_indices = @transform_5, window_bounds = array<i64: 96, 96>}, {pipeline_mode = #tpu.pipeline_mode<synchronous>, transform_indices = @transform_6, window_bounds = array<i64: 96, 1>}, {pipeline_mode = #tpu.pipeline_mode<synchronous>, transform_indices = @transform_7, window_bounds = array<i64: 32, 32>}, {pipeline_mode = #tpu.pipeline_mode<synchronous>, transform_indices = @transform_8, window_bounds = array<i64: 32, 1>}, {pipeline_mode = #tpu.pipeline_mode<synchronous>, transform_indices = @transform_9, window_bounds = array<i64: 32, 32>}, {pipeline_mode = #tpu.pipeline_mode<synchronous>, transform_indices = @transform_10, window_bounds = array<i64: 32, 1>}, {pipeline_mode = #tpu.pipeline_mode<synchronous>, transform_indices = @transform_11, window_bounds = array<i64: 4, 32>}, {pipeline_mode = #tpu.pipeline_mode<synchronous>, transform_indices = @transform_12, window_bounds = array<i64: 4, 1>}, {transform_indices = @transform_13, window_bounds = array<i64: 1, 128>}]} {
    %c0 = arith.constant 0 : index
    %c0_0 = arith.constant 0 : index
    %0 = vector.load %arg1[%c0, %c0_0] : memref<20x128xf32, #tpu.memory_space<vmem>>, vector<20x128xf32>
    %1 = vector.extract_strided_slice %0 {offsets = [0, 0], sizes = [4, 128], strides = [1, 1]} : vector<20x128xf32> to vector<4x128xf32>
    %2 = vector.extract_strided_slice %0 {offsets = [4, 0], sizes = [4, 128], strides = [1, 1]} : vector<20x128xf32> to vector<4x128xf32>
    %3 = vector.extract_strided_slice %0 {offsets = [8, 0], sizes = [8, 128], strides = [1, 1]} : vector<20x128xf32> to vector<8x128xf32>
    %4 = vector.extract_strided_slice %0 {offsets = [16, 0], sizes = [1, 128], strides = [1, 1]} : vector<20x128xf32> to vector<1x128xf32>
    %5 = vector.extract_strided_slice %0 {offsets = [17, 0], sizes = [1, 128], strides = [1, 1]} : vector<20x128xf32> to vector<1x128xf32>
    %6 = vector.extract_strided_slice %0 {offsets = [18, 0], sizes = [1, 128], strides = [1, 1]} : vector<20x128xf32> to vector<1x128xf32>
    %7 = vector.extract_strided_slice %0 {offsets = [19, 0], sizes = [1, 128], strides = [1, 1]} : vector<20x128xf32> to vector<1x128xf32>
    %8 = vector.broadcast %6 : vector<1x128xf32> to vector<4x128xf32>
    %9 = arith.mulf %8, %1 : vector<4x128xf32>
    %10 = vector.broadcast %7 : vector<1x128xf32> to vector<4x128xf32>
    %11 = arith.mulf %10, %2 : vector<4x128xf32>
    %12 = arith.addf %9, %11 : vector<4x128xf32>
    %cst = arith.constant 1.000000e+00 : f32
    %13 = vector.broadcast %cst : f32 to vector<1x128xf32>
    %14 = arith.subf %5, %13 : vector<1x128xf32>
    %15 = vector.broadcast %14 : vector<1x128xf32> to vector<8x128xf32>
    %16 = arith.mulf %3, %15 : vector<8x128xf32>
    %c0_1 = arith.constant 0 : index
    %c0_2 = arith.constant 0 : index
    %17 = vector.load %arg2[%c0_1, %c0_2] : memref<32x4xf32, #tpu.memory_space<vmem>>, vector<32x4xf32>
    %cst_3 = arith.constant dense<0.000000e+00> : vector<32x128xf32>
    %18 = tpu.matmul %17, %12, %cst_3 {dimension_numbers = #tpu.dot_dimension_numbers<[1], [0], [0], [1], [0, 0, 1, 1], [], []>} : vector<32x4xf32>, vector<4x128xf32>, vector<32x128xf32> -> vector<32x128xf32>
    %c0_4 = arith.constant 0 : index
    %c0_5 = arith.constant 0 : index
    %19 = vector.load %arg3[%c0_4, %c0_5] : memref<32x8xf32, #tpu.memory_space<vmem>>, vector<32x8xf32>
    %cst_6 = arith.constant dense<0.000000e+00> : vector<32x128xf32>
    %20 = tpu.matmul %19, %16, %cst_6 {dimension_numbers = #tpu.dot_dimension_numbers<[1], [0], [0], [1], [0, 0, 1, 1], [], []>} : vector<32x8xf32>, vector<8x128xf32>, vector<32x128xf32> -> vector<32x128xf32>
    %c0_7 = arith.constant 0 : index
    %c0_8 = arith.constant 0 : index
    %21 = vector.load %arg4[%c0_7, %c0_8] : memref<32x1xf32, #tpu.memory_space<vmem>>, vector<32x1xf32>
    %22 = vector.broadcast %21 : vector<32x1xf32> to vector<32x128xf32>
    %23 = vector.broadcast %4 : vector<1x128xf32> to vector<32x128xf32>
    %24 = arith.mulf %22, %23 : vector<32x128xf32>
    %25 = tpu.concatenate %18, %20, %24 in 0 : vector<32x128xf32>, vector<32x128xf32>, vector<32x128xf32> -> vector<96x128xf32>
    %c0_9 = arith.constant 0 : index
    %c0_10 = arith.constant 0 : index
    %26 = vector.load %arg5[%c0_9, %c0_10] : memref<96x1xf32, #tpu.memory_space<vmem>>, vector<96x1xf32>
    %27 = vector.broadcast %26 : vector<96x1xf32> to vector<96x128xf32>
    %28 = arith.addf %25, %27 : vector<96x128xf32>
    %cst_11 = arith.constant 1.000000e+02 : f32
    %29 = vector.broadcast %cst_11 : f32 to vector<96x128xf32>
    %30 = arith.mulf %29, %28 : vector<96x128xf32>
    %cst_12 = arith.constant 2.000000e+01 : f32
    %31 = vector.broadcast %cst_12 : f32 to vector<96x128xf32>
    %32 = arith.minimumf %30, %31 : vector<96x128xf32>
    %cst_13 = arith.constant 2.000000e+01 : f32
    %33 = vector.broadcast %cst_13 : f32 to vector<96x128xf32>
    %34 = arith.cmpf ogt, %30, %33 : vector<96x128xf32>
    %35 = math.exp %32 : vector<96x128xf32>
    %36 = math.log1p %35 : vector<96x128xf32>
    %cst_14 = arith.constant 1.000000e+02 : f32
    %37 = vector.broadcast %cst_14 : f32 to vector<96x128xf32>
    %38 = arith.divf %36, %37 : vector<96x128xf32>
    %39 = arith.select %34, %28, %38 : vector<96x128xi1>, vector<96x128xf32>
    %c0_15 = arith.constant 0 : index
    %c0_16 = arith.constant 0 : index
    %40 = vector.load %arg6[%c0_15, %c0_16] : memref<96x96xf32, #tpu.memory_space<vmem>>, vector<96x96xf32>
    %cst_17 = arith.constant dense<0.000000e+00> : vector<96x128xf32>
    %41 = tpu.matmul %40, %39, %cst_17 {dimension_numbers = #tpu.dot_dimension_numbers<[1], [0], [0], [1], [0, 0, 1, 1], [], []>} : vector<96x96xf32>, vector<96x128xf32>, vector<96x128xf32> -> vector<96x128xf32>
    %c0_18 = arith.constant 0 : index
    %c0_19 = arith.constant 0 : index
    %42 = vector.load %arg7[%c0_18, %c0_19] : memref<96x1xf32, #tpu.memory_space<vmem>>, vector<96x1xf32>
    %43 = vector.broadcast %42 : vector<96x1xf32> to vector<96x128xf32>
    %44 = arith.addf %41, %43 : vector<96x128xf32>
    %45 = vector.extract_strided_slice %44 {offsets = [0, 0], sizes = [32, 128], strides = [1, 1]} : vector<96x128xf32> to vector<32x128xf32>
    %46 = vector.extract_strided_slice %44 {offsets = [32, 0], sizes = [32, 128], strides = [1, 1]} : vector<96x128xf32> to vector<32x128xf32>
    %47 = vector.extract_strided_slice %44 {offsets = [64, 0], sizes = [32, 128], strides = [1, 1]} : vector<96x128xf32> to vector<32x128xf32>
    %48 = arith.mulf %46, %45 : vector<32x128xf32>
    %49 = arith.addf %48, %47 : vector<32x128xf32>
    %c0_20 = arith.constant 0 : index
    %c0_21 = arith.constant 0 : index
    %50 = vector.load %arg8[%c0_20, %c0_21] : memref<32x32xf32, #tpu.memory_space<vmem>>, vector<32x32xf32>
    %cst_22 = arith.constant dense<0.000000e+00> : vector<32x128xf32>
    %51 = tpu.matmul %50, %49, %cst_22 {dimension_numbers = #tpu.dot_dimension_numbers<[1], [0], [0], [1], [0, 0, 1, 1], [], []>} : vector<32x32xf32>, vector<32x128xf32>, vector<32x128xf32> -> vector<32x128xf32>
    %c0_23 = arith.constant 0 : index
    %c0_24 = arith.constant 0 : index
    %52 = vector.load %arg9[%c0_23, %c0_24] : memref<32x1xf32, #tpu.memory_space<vmem>>, vector<32x1xf32>
    %53 = vector.broadcast %52 : vector<32x1xf32> to vector<32x128xf32>
    %54 = arith.addf %51, %53 : vector<32x128xf32>
    %cst_25 = arith.constant 1.000000e+02 : f32
    %55 = vector.broadcast %cst_25 : f32 to vector<32x128xf32>
    %56 = arith.mulf %55, %54 : vector<32x128xf32>
    %cst_26 = arith.constant 2.000000e+01 : f32
    %57 = vector.broadcast %cst_26 : f32 to vector<32x128xf32>
    %58 = arith.minimumf %56, %57 : vector<32x128xf32>
    %cst_27 = arith.constant 2.000000e+01 : f32
    %59 = vector.broadcast %cst_27 : f32 to vector<32x128xf32>
    %60 = arith.cmpf ogt, %56, %59 : vector<32x128xf32>
    %61 = math.exp %58 : vector<32x128xf32>
    %62 = math.log1p %61 : vector<32x128xf32>
    %cst_28 = arith.constant 1.000000e+02 : f32
    %63 = vector.broadcast %cst_28 : f32 to vector<32x128xf32>
    %64 = arith.divf %62, %63 : vector<32x128xf32>
    %65 = arith.select %60, %54, %64 : vector<32x128xi1>, vector<32x128xf32>
    %c0_29 = arith.constant 0 : index
    %c0_30 = arith.constant 0 : index
    %66 = vector.load %arg10[%c0_29, %c0_30] : memref<32x32xf32, #tpu.memory_space<vmem>>, vector<32x32xf32>
    %cst_31 = arith.constant dense<0.000000e+00> : vector<32x128xf32>
    %67 = tpu.matmul %66, %65, %cst_31 {dimension_numbers = #tpu.dot_dimension_numbers<[1], [0], [0], [1], [0, 0, 1, 1], [], []>} : vector<32x32xf32>, vector<32x128xf32>, vector<32x128xf32> -> vector<32x128xf32>
    %c0_32 = arith.constant 0 : index
    %c0_33 = arith.constant 0 : index
    %68 = vector.load %arg11[%c0_32, %c0_33] : memref<32x1xf32, #tpu.memory_space<vmem>>, vector<32x1xf32>
    %69 = vector.broadcast %68 : vector<32x1xf32> to vector<32x128xf32>
    %70 = arith.addf %67, %69 : vector<32x128xf32>
    %cst_34 = arith.constant 1.000000e+02 : f32
    %71 = vector.broadcast %cst_34 : f32 to vector<32x128xf32>
    %72 = arith.mulf %71, %70 : vector<32x128xf32>
    %cst_35 = arith.constant 2.000000e+01 : f32
    %73 = vector.broadcast %cst_35 : f32 to vector<32x128xf32>
    %74 = arith.minimumf %72, %73 : vector<32x128xf32>
    %cst_36 = arith.constant 2.000000e+01 : f32
    %75 = vector.broadcast %cst_36 : f32 to vector<32x128xf32>
    %76 = arith.cmpf ogt, %72, %75 : vector<32x128xf32>
    %77 = math.exp %74 : vector<32x128xf32>
    %78 = math.log1p %77 : vector<32x128xf32>
    %cst_37 = arith.constant 1.000000e+02 : f32
    %79 = vector.broadcast %cst_37 : f32 to vector<32x128xf32>
    %80 = arith.divf %78, %79 : vector<32x128xf32>
    %81 = arith.select %76, %70, %80 : vector<32x128xi1>, vector<32x128xf32>
    %c0_38 = arith.constant 0 : index
    %c0_39 = arith.constant 0 : index
    %82 = vector.load %arg12[%c0_38, %c0_39] : memref<4x32xf32, #tpu.memory_space<vmem>>, vector<4x32xf32>
    %cst_40 = arith.constant dense<0.000000e+00> : vector<4x128xf32>
    %83 = tpu.matmul %82, %81, %cst_40 {dimension_numbers = #tpu.dot_dimension_numbers<[1], [0], [0], [1], [0, 0, 1, 1], [], []>} : vector<4x32xf32>, vector<32x128xf32>, vector<4x128xf32> -> vector<4x128xf32>
    %c0_41 = arith.constant 0 : index
    %c0_42 = arith.constant 0 : index
    %84 = vector.load %arg13[%c0_41, %c0_42] : memref<4x1xf32, #tpu.memory_space<vmem>>, vector<4x1xf32>
    %85 = vector.broadcast %84 : vector<4x1xf32> to vector<4x128xf32>
    %86 = arith.addf %83, %85 : vector<4x128xf32>
    %87 = arith.subf %2, %86 : vector<4x128xf32>
    %88 = arith.mulf %87, %87 : vector<4x128xf32>
    %cst_43 = arith.constant dense<0.000000e+00> : vector<128xf32>
    %89 = vector.multi_reduction <add>, %88, %cst_43 [0] : vector<4x128xf32> to vector<128xf32>
    %90 = vector.shape_cast %89 : vector<128xf32> to vector<1x128xf32>
    %c0_44 = arith.constant 0 : index
    %c0_45 = arith.constant 0 : index
    %91 = vector.load %arg14[%c0_44, %c0_45] : memref<1x128xf32, #tpu.memory_space<vmem>>, vector<1x128xf32>
    tpu.vector_store %arg14[%c0_44, %c0_45], %90 {strides = array<i32>} : memref<1x128xf32, #tpu.memory_space<vmem>>, vector<1x128xf32>,
    return
  }
  func.func @transform_0(%arg0: i32) -> (i32, i32) {
    %c0_i32 = arith.constant 0 : i32
    %c0_i32_0 = arith.constant 0 : i32
    return %c0_i32, %arg0 : i32, i32
  }
  func.func @transform_1(%arg0: i32) -> (i32, i32) {
    %c0_i32 = arith.constant 0 : i32
    %c0_i32_0 = arith.constant 0 : i32
    %c0_i32_1 = arith.constant 0 : i32
    return %c0_i32, %c0_i32_0 : i32, i32
  }
  func.func @transform_2(%arg0: i32) -> (i32, i32) {
    %c0_i32 = arith.constant 0 : i32
    %c0_i32_0 = arith.constant 0 : i32
    %c0_i32_1 = arith.constant 0 : i32
    return %c0_i32, %c0_i32_0 : i32, i32
  }
  func.func @transform_3(%arg0: i32) -> (i32, i32) {
    %c0_i32 = arith.constant 0 : i32
    %c0_i32_0 = arith.constant 0 : i32
    %c0_i32_1 = arith.constant 0 : i32
    return %c0_i32, %c0_i32_0 : i32, i32
  }
  func.func @transform_4(%arg0: i32) -> (i32, i32) {
    %c0_i32 = arith.constant 0 : i32
    %c0_i32_0 = arith.constant 0 : i32
    %c0_i32_1 = arith.constant 0 : i32
    return %c0_i32, %c0_i32_0 : i32, i32
  }
  func.func @transform_5(%arg0: i32) -> (i32, i32) {
    %c0_i32 = arith.constant 0 : i32
    %c0_i32_0 = arith.constant 0 : i32
    %c0_i32_1 = arith.constant 0 : i32
    return %c0_i32, %c0_i32_0 : i32, i32
  }
  func.func @transform_6(%arg0: i32) -> (i32, i32) {
    %c0_i32 = arith.constant 0 : i32
    %c0_i32_0 = arith.constant 0 : i32
    %c0_i32_1 = arith.constant 0 : i32
    return %c0_i32, %c0_i32_0 : i32, i32
  }
  func.func @transform_7(%arg0: i32) -> (i32, i32) {
    %c0_i32 = arith.constant 0 : i32
    %c0_i32_0 = arith.constant 0 : i32
    %c0_i32_1 = arith.constant 0 : i32
    return %c0_i32, %c0_i32_0 : i32, i32
  }
  func.func @transform_8(%arg0: i32) -> (i32, i32) {
    %c0_i32 = arith.constant 0 : i32
    %c0_i32_0 = arith.constant 0 : i32
    %c0_i32_1 = arith.constant 0 : i32
    return %c0_i32, %c0_i32_0 : i32, i32
  }
  func.func @transform_9(%arg0: i32) -> (i32, i32) {
    %c0_i32 = arith.constant 0 : i32
    %c0_i32_0 = arith.constant 0 : i32
    %c0_i32_1 = arith.constant 0 : i32
    return %c0_i32, %c0_i32_0 : i32, i32
  }
  func.func @transform_10(%arg0: i32) -> (i32, i32) {
    %c0_i32 = arith.constant 0 : i32
    %c0_i32_0 = arith.constant 0 : i32
    %c0_i32_1 = arith.constant 0 : i32
    return %c0_i32, %c0_i32_0 : i32, i32
  }
  func.func @transform_11(%arg0: i32) -> (i32, i32) {
    %c0_i32 = arith.constant 0 : i32
    %c0_i32_0 = arith.constant 0 : i32
    %c0_i32_1 = arith.constant 0 : i32
    return %c0_i32, %c0_i32_0 : i32, i32
  }
  func.func @transform_12(%arg0: i32) -> (i32, i32) {
    %c0_i32 = arith.constant 0 : i32
    %c0_i32_0 = arith.constant 0 : i32
    %c0_i32_1 = arith.constant 0 : i32
    return %c0_i32, %c0_i32_0 : i32, i32
  }
  func.func @transform_13(%arg0: i32) -> (i32, i32) {
    %c0_i32 = arith.constant 0 : i32
    %c0_i32_0 = arith.constant 0 : i32
    return %arg0, %c0_i32 : i32, i32
  }
}

</mosaic_0001>

<bundles_post_ra>
// kernel: tpu_custom_call.1
= control target key start
LH: loop header
LB: loop body
LE: loop exit
PB: predicated region body
PF: predicated region fallthrough
CT: control target
= control target key end

     0   :  { %v48_v0 = vlaneseq  ;;  %vm72_vm0 = vcmask 31744   ;;  %v1669_v3 = vmov 0   ;;  %vm85_vm1 = vcmask 1043456   ;;  %s2343_s0 = inlined_call_operand.vmem [shape: f32[20,128], index: 0, kind: input, shape index: {}]   ;;  %s2344_s1 = inlined_call_operand.vmem [shape: f32[32,4], index: 1, kind: input, shape index: {}]   ;;  %s2345_s2 = inlined_call_operand.vmem [shape: f32[32,8], index: 2, kind: input, shape index: {}]   ;;  %s2346_s3 = inlined_call_operand.vmem [shape: f32[32,1], index: 3, kind: input, shape index: {}]   ;;  %s2347_s4 = inlined_call_operand.vmem [shape: f32[96,1], index: 4, kind: input, shape index: {}]   ;;  %s2348_s5 = inlined_call_operand.vmem [shape: f32[96,96], index: 5, kind: input, shape index: {}]   ;;  %s2349_s6 = inlined_call_operand.vmem [shape: f32[96,1], index: 6, kind: input, shape index: {}]   ;;  %s2350_s7 = inlined_call_operand.vmem [shape: f32[32,32], index: 7, kind: input, shape index: {}]   ;;  %s2351_s8 = inlined_call_operand.vmem [shape: f32[32,1], index: 8, kind: input, shape index: {}]   ;;  %s2352_s9 = inlined_call_operand.vmem [shape: f32[32,32], index: 9, kind: input, shape index: {}]   ;;  %s2353_s10 = inlined_call_operand.vmem [shape: f32[32,1], index: 10, kind: input, shape index: {}]   ;;  %s2354_s11 = inlined_call_operand.vmem [shape: f32[4,32], index: 11, kind: input, shape index: {}]   ;;  %s2355_s12 = inlined_call_operand.vmem [shape: f32[4,1], index: 12, kind: input, shape index: {}]   ;;  %s2356_s13 = inlined_call_operand.hbm [shape: f32[1,128], index: 13, kind: output, shape index: {}]  }
   0x1   :  { %v68_v1 = vld [vmem:[%s2344_s1] sm:$0xff]  ;;  %1562 = vset.pattern.permute.xlu0 %v1669_v3  ;;  %1563 = vset.pattern.permute.xlu1 %v1669_v3  ;;  %v47_v5 = vld [vmem:[%s2343_s0 + $0x10] sm:$0xf]  ;;  %v309_v11 = vld [vmem:[%s2347_s4 + $0x8] sm:$0xff] }
   0x2   :  { %1416 = vmatprep.mubr.msk.f32.mxu1 %vm72_vm0, %v68_v1  ;;  %v49_v2 = vshrl.u32 %v48_v0, 7  ;;  %v308_v4 = vld [vmem:[%s2347_s4] sm:$0xff]  ;;  %v310_v6 = vld [vmem:[%s2347_s4 + $0x10] sm:$0xff]  ;;  %v1328_v9 = vadd.f32 -1.0, %v47_v5  ;;  %v311_v13 = vld [vmem:[%s2347_s4 + $0x18] sm:$0xff] }
   0x3   :  { %322 = vperm.xlu0 %1562, %v308_v4   ;;  %332 = vperm.xlu1 %1563, %v310_v6   ;;  %v45_v12 = vld [vmem:[%s2343_s0] sm:$0xff]  ;;  %v46_v20 = vld [vmem:[%s2343_s0 + $0x8] sm:$0xff]  ;;  %v314_v25 = vld [vmem:[%s2347_s4 + $0x30] sm:$0xff] }
   0x4   :  { %v50_v7 = vsub.s32 2, %v49_v2  ;;  %v55_v8 = vsub.s32 3, %v49_v2  ;;  %v65_v10 = vsub.s32 1, %v49_v2  ;;  %v312_v19 = vld [vmem:[%s2347_s4 + $0x20] sm:$0xff]  ;;  %v313_v21 = vld [vmem:[%s2347_s4 + $0x28] sm:$0xff]  ;;  %v70_v27 = vld [vmem:[%s2344_s1 + $0x10] sm:$0xff] }
   0x5   :  { %v69_v26 = vld [vmem:[%s2344_s1 + $0x8] sm:$0xff]  ;;  %v315_v28 = vld [vmem:[%s2347_s4 + $0x38] sm:$0xff]  ;;  %v276_v29 = vld [vmem:[%s2346_s3] sm:$0xff] }
   0x6   :  { %v51_v14 = vrot.slane %v47_v5, %v50_v7  ;;  %v56_v15 = vrot.slane %v47_v5, %v55_v8  ;;  %v66_v18 = vrot.slane %v1328_v9, %v65_v10 }
   0x7   :  { %327 = vperm.xlu0 %1562, %v309_v11   ;;  %337 = vperm.xlu1 %1563, %v311_v13  }
   0x8   :  { %v52_v16 = vmul.f32 %v51_v14, %v45_v12  ;;  %v57_v17 = vmul.f32 %v56_v15, %v45_v12  ;;  %v67_v24 = vmul.f32 %v66_v18, %v46_v20 }
   0xa   :  { %v59_v22 = vrot.slane %v57_v17, 4 }
   0xb   :  { %342 = vperm.xlu0 %1562, %v312_v19   ;;  %347 = vperm.xlu1 %1563, %v313_v21  }
   0xc   :  { %v61_v23 = vadd.f32 %v59_v22, %v52_v16 }
   0xe   :  { %1414 = vmatprep.subr.msk.mxu1 %vm85_vm1, %v61_v23 }
   0xf   :  { %1415 = vmatpush3.msk.msra.mxu1 %vm85_vm1, %v61_v23  ;;  %352 = vperm.xlu0 %1562, %v314_v25  }
  0x10   :  { %1417 = vmatmul.mubr.msk.f32.vlgmr.msra.gmra.mrb[0].mxu1 %vm72_vm0, %v69_v26  ;;  %1422 = vmatprep.subr.mxu1 %v67_v24 }
  0x11   :  { %18 = vsyncpa [#allocation3], 0  ;;  %1423 = vmatpush3.msra.mxu1 %v67_v24  ;;  %1419 = vmatprep.mubr.msk.f32.mxu1 %vm72_vm0, %v70_v27  ;;  %v71_v30 = vld [vmem:[%s2344_s1 + $0x18] sm:$0xff]  ;;  %v174_v31 = vld [vmem:[%s2345_s2] sm:$0xff]  ;;  %vm178_vm2 = vcmask 64512   ;;  %v302_v32 = vsub.s32 0, %v49_v2 }
  0x12   :  { %357 = vperm.xlu1 %1563, %v315_v28   ;;  %v277_v33 = vld [vmem:[%s2346_s3 + $0x8] sm:$0xff]  ;;  %v316_v34 = vld [vmem:[%s2347_s4 + $0x40] sm:$0xff]  ;;  %v176_v37 = vld [vmem:[%s2345_s2 + $0x10] sm:$0xff]  ;;  %vm669_vm3 = vcmask 785408  }
  0x13   :  { %282 = vperm.xlu0 %1562, %v276_v29   ;;  %v1807_v35 = vrot.slane %v47_v5, %v302_v32  ;;  %v175_v36 = vld [vmem:[%s2345_s2 + $0x8] sm:$0xff]  ;;  %v278_v39 = vld [vmem:[%s2346_s3 + $0x10] sm:$0xff]  ;;  %v177_v40 = vld [vmem:[%s2345_s2 + $0x18] sm:$0xff] }
  0x14   :  { %1420 = vmatmul.mubr.msk.f32.gmra.mrb[2].mxu1 %vm72_vm0, %v71_v30  ;;  %v317_v38 = vld [vmem:[%s2347_s4 + $0x48] sm:$0xff]  ;;  %v279_v41 = vld [vmem:[%s2346_s3 + $0x18] sm:$0xff]  ;;  %v318_v42 = vld [vmem:[%s2347_s4 + $0x50] sm:$0xff] }
  0x15   :  { %1424 = vmatprep.mubr.msk.f32.mxu1 %vm178_vm2, %v174_v31  ;;  %v319_v43 = vld [vmem:[%s2347_s4 + $0x58] sm:$0xff]  ;;  %v597_v44 = vld [vmem:[%s2349_s6] sm:$0xff]  ;;  %v598_v45 = vld [vmem:[%s2349_s6 + $0x8] sm:$0xff] }
  0x16   :  { %287 = vperm.xlu1 %1563, %v277_v33   ;;  %v601_v46 = vld [vmem:[%s2349_s6 + $0x20] sm:$0xff]  ;;  %v602_v47 = vld [vmem:[%s2349_s6 + $0x28] sm:$0xff]  ;;  %v599_v50 = vld [vmem:[%s2349_s6 + $0x10] sm:$0xff] }
  0x17   :  { %362 = vperm.xlu0 %1562, %v316_v34   ;;  %v605_v48 = vld [vmem:[%s2349_s6 + $0x40] sm:$0xff]  ;;  %v606_v49 = vld [vmem:[%s2349_s6 + $0x48] sm:$0xff]  ;;  %v600_v51 = vld [vmem:[%s2349_s6 + $0x18] sm:$0xff] }
  0x18   :  { %1425 = vmatmul.mubr.msk.f32.vlgmr.msra.gmra.mrb[4].mxu1 %vm178_vm2, %v175_v36  ;;  %v603_v52 = vld [vmem:[%s2349_s6 + $0x30] sm:$0xff]  ;;  %v604_v53 = vld [vmem:[%s2349_s6 + $0x38] sm:$0xff]  ;;  %v843_v56 = vld [vmem:[%s2351_s8] sm:$0xff] }
  0x19   :  { %1427 = vmatprep.mubr.msk.f32.mxu1 %vm178_vm2, %v176_v37  ;;  %v607_v54 = vld [vmem:[%s2349_s6 + $0x50] sm:$0xff]  ;;  %v608_v55 = vld [vmem:[%s2349_s6 + $0x58] sm:$0xff]  ;;  %v844_v57 = vld [vmem:[%s2351_s8 + $0x8] sm:$0xff] }
  0x1a   :  { %367 = vperm.xlu1 %1563, %v317_v38   ;;  %v845_v58 = vld [vmem:[%s2351_s8 + $0x10] sm:$0xff]  ;;  %v846_v59 = vld [vmem:[%s2351_s8 + $0x18] sm:$0xff]  ;;  %v1033_v60 = vld [vmem:[%s2353_s10] sm:$0xff] }
  0x1b   :  { %292 = vperm.xlu0 %1562, %v278_v39   ;;  %v1034_v61 = vld [vmem:[%s2353_s10 + $0x8] sm:$0xff]  ;;  %v1035_v62 = vld [vmem:[%s2353_s10 + $0x10] sm:$0xff]  ;;  %v1036_v63 = vld [vmem:[%s2353_s10 + $0x18] sm:$0xff] }
  0x1c   :  { %1428 = vmatmul.mubr.msk.f32.gmra.mrb[6].mxu1 %vm178_vm2, %v177_v40  ;;  %v1219_v0 = vld [vmem:[%s2355_s12] sm:$0xf] }
  0x1d   :  { %v585_v1 = vld [vmem:[%s2348_s5] sm:$0xff] }
  0x1e   :  { %297 = vperm.xlu1 %1563, %v279_v41   ;;  %1454 = vmatprep.mubr.msk.f32.mxu0 %vm669_vm3, %v585_v1 }
  0x1f   :  { %372 = vperm.xlu0 %1562, %v318_v42  }
  0x22   :  { %377 = vperm.xlu1 %1563, %v319_v43  }
  0x23   :  { %611 = vperm.xlu0 %1562, %v597_v44  }
  0x26   :  { %616 = vperm.xlu1 %1563, %v598_v45  }
  0x27   :  { %631 = vperm.xlu0 %1562, %v601_v46  }
  0x2a   :  { %636 = vperm.xlu1 %1563, %v602_v47  }
  0x2b   :  { %651 = vperm.xlu0 %1562, %v605_v48  }
  0x2e   :  { %656 = vperm.xlu1 %1563, %v606_v49  }
  0x2f   :  { %621 = vperm.xlu0 %1562, %v599_v50  }
  0x32   :  { %626 = vperm.xlu1 %1563, %v600_v51  }
  0x33   :  { %641 = vperm.xlu0 %1562, %v603_v52  }
  0x36   :  { %646 = vperm.xlu1 %1563, %v604_v53  }
  0x37   :  { %661 = vperm.xlu0 %1562, %v607_v54  }
  0x3a   :  { %666 = vperm.xlu1 %1563, %v608_v55  }
  0x3b   :  { %849 = vperm.xlu0 %1562, %v843_v56  }
  0x3e   :  { %854 = vperm.xlu1 %1563, %v844_v57  }
  0x3f   :  { %859 = vperm.xlu0 %1562, %v845_v58  }
  0x42   :  { %864 = vperm.xlu1 %1563, %v846_v59  }
  0x43   :  { %1039 = vperm.xlu0 %1562, %v1033_v60  }
  0x46   :  { %1044 = vperm.xlu1 %1563, %v1034_v61  }
  0x47   :  { %1049 = vperm.xlu0 %1562, %v1035_v62  }
  0x4a   :  { %1054 = vperm.xlu1 %1563, %v1036_v63  }
  0x4b   :  { %1222 = vperm.xlu0 %1562, %v1219_v0  }
  0x82   :  { %v323_v2 = vpop.permute.xlu0 %322  ;;  %v333_v3 = vpop.permute.xlu1 %332 }
  0x86   :  { %v328_v4 = vpop.permute.xlu0 %327  ;;  %v338_v5 = vpop.permute.xlu1 %337 }
  0x8a   :  { %v1904_v6 = vpop.permute.xlu0 %342  ;;  %v348_v7 = vpop.permute.xlu1 %347 }
  0x8e   :  { %v1906_v8 = vpop.permute.xlu0 %352 }
  0x91   :  { %v1908_v9 = vpop.permute.xlu1 %357 }
  0x92   :  { %v283_v10 = vpop.permute.xlu0 %282 }
  0x93   :  { %v304_v14 = vmul.f32 %v1807_v35, %v283_v10 }
  0x95   :  { %v288_v11 = vpop.permute.xlu1 %287 }
  0x96   :  { %v363_v12 = vpop.permute.xlu0 %362  ;;  %v305_v15 = vmul.f32 %v1807_v35, %v288_v11 }
  0x97   :  { %v1912_v16 = vadd.f32 %v363_v12, %v304_v14 }
  0x99   :  { %v368_v13 = vpop.permute.xlu1 %367  ;;  %v1918_v21 = vmul.f32 100.0, %v1912_v16 }
  0x9a   :  { %v293_v17 = vpop.permute.xlu0 %292  ;;  %v1914_v19 = vadd.f32 %v368_v13, %v305_v15 }
  0x9b   :  { %v306_v20 = vmul.f32 %v1807_v35, %v293_v17  ;;  %v412_v27 = vmin.f32 %v1918_v21, 20.0  ;;  %vm424_vm2 = vcmp.gt.f32.partialorder %v1918_v21, 20.0 }
  0x9c   :  { %v1922_v24 = vmul.f32 100.0, %v1914_v19 }
  0x9d   :  { %v298_v18 = vpop.permute.xlu1 %297  ;;  %v444_v31 = vmul.f32 1.442695, %v412_v27 }
  0x9e   :  { %v307_v22 = vmul.f32 %v1807_v35, %v298_v18  ;;  %v373_v23 = vpop.permute.xlu0 %372  ;;  %v413_v29 = vmin.f32 %v1922_v24, 20.0 }
  0x9f   :  { %v1924_v25 = vadd.f32 %v373_v23, %v306_v20  ;;  %1564 = vpow2.f32 %v444_v31 }
  0xa0   :  { %v446_v33 = vmul.f32 1.442695, %v413_v29 }
  0xa1   :  { %2359 = vst [vmem:[#allocation5_spill] sm:$0xff] %v1924_v25  ;;  %v378_v26 = vpop.permute.xlu1 %377  ;;  %v1931_v30 = vmul.f32 100.0, %v1924_v25 }
  0xa2   :  { %v1927_v28 = vadd.f32 %v378_v26, %v307_v22  ;;  %1566 = vpow2.f32 %v446_v33 }
  0xa3   :  { %v414_v34 = vmin.f32 %v1931_v30, 20.0 }
  0xa4   :  { %2360 = vst [vmem:[#allocation6_spill] sm:$0xff] %v1927_v28  ;;  %v1934_v32 = vmul.f32 100.0, %v1927_v28 }
  0xa5   :  { %v448_v36 = vmul.f32 1.442695, %v414_v34 }
  0xa6   :  { %v415_v35 = vmin.f32 %v1934_v32, 20.0 }
  0xa7   :  { %1568 = vpow2.f32 %v448_v36 }
  0xa8   :  { %v450_v37 = vmul.f32 1.442695, %v415_v35 }
  0xa9   :  { %v1938_v39 = vpop.eup %1564 }
  0xaa   :  { %1570 = vpow2.f32 %v450_v37  ;;  %v524_v47 = vadd.f32 1.0, %v1938_v39  ;;  %v527_v17 = vmul.f32 -0.5, %v1938_v39 }
  0xac   :  { %v1947_v44 = vpop.eup %1566  ;;  %1572 = vlog2.f32 %v524_v47  ;;  %v528_v31 = vadd.f32 1.0, %v527_v17 }
  0xad   :  { %v533_v55 = vadd.f32 1.0, %v1947_v44  ;;  %v539_v36 = vand.u32 2147483647, %v1947_v44 }
  0xaf   :  { %vm2021_vm5 = vcmp.lt.f32.partialorder %v539_v36, 0.0004427343 }
  0xb1   :  { %v1963_v56 = vpop.eup %1568 }
  0xb2   :  { %v545_v33 = vmul.f32 -0.5, %v1963_v56 }
  0xb4   :  { %v1968_v60 = vpop.eup %1570 }
  0xb5   :  { %v551_v11 = vadd.f32 1.0, %v1968_v60  ;;  %v554_v37 = vmul.f32 -0.5, %v1968_v60 }
  0xb6   :  { %v1573_v27 = vpop.eup %1572 }
  0xe3   :  { %v1418_v38 = vpop.f32.mrb[0].mxu1 }
  0xe4   :  { %v1940_v40 = vadd.f32 %v1418_v38, %v328_v4  ;;  %v155_v41 = vpop.f32.mrb[1].mxu1  ;;  %v542_v4 = vadd.f32 1.0, %v1963_v56 }
  0xe5   :  { %v1942_v42 = vadd.f32 %v323_v2, %v155_v41 }
  0xe6   :  { %v1945_v43 = vmul.f32 100.0, %v1940_v40 }
  0xe7   :  { %v1950_v45 = vmul.f32 100.0, %v1942_v42  ;;  %v1421_v46 = vpop.f32.mrb[2].mxu1 }
  0xe8   :  { %v405_v48 = vmin.f32 %v1945_v43, 20.0  ;;  %v1954_v49 = vadd.f32 %v1421_v46, %v338_v5  ;;  %v165_v50 = vpop.f32.mrb[3].mxu1  ;;  %vm417_vm6 = vcmp.gt.f32.partialorder %v1945_v43, 20.0 }
  0xe9   :  { %v404_v51 = vmin.f32 %v1950_v45, 20.0  ;;  %v1957_v52 = vadd.f32 %v333_v3, %v165_v50  ;;  %vm416_vm7 = vcmp.gt.f32.partialorder %v1950_v45, 20.0 }
  0xea   :  { %v430_v53 = vmul.f32 1.442695, %v405_v48  ;;  %v1960_v54 = vmul.f32 100.0, %v1954_v49 }
  0xeb   :  { %v428_v57 = vmul.f32 1.442695, %v404_v51  ;;  %v1966_v58 = vmul.f32 100.0, %v1957_v52  ;;  %v1426_v59 = vpop.f32.mrb[4].mxu1  ;;  %v2011_v51 = vmul.f32 %v1938_v39, %v528_v31 }
  0xec   :  { %1574 = vpow2.f32 %v430_v53  ;;  %v407_v61 = vmin.f32 %v1960_v54, 20.0  ;;  %v1971_v62 = vadd.f32 %v1426_v59, %v348_v7  ;;  %v257_v63 = vpop.f32.mrb[5].mxu1  ;;  %v2019_v59 = vmul.f32 0.6931472, %v1573_v27 }
  0xed   :  { %1576 = vpow2.f32 %v428_v57  ;;  %v406_v0 = vmin.f32 %v1966_v58, 20.0  ;;  %v1975_v1 = vadd.f32 %v1904_v6, %v257_v63  ;;  %v555_v63 = vadd.f32 1.0, %v554_v37 }
  0xee   :  { %v434_v2 = vmul.f32 1.442695, %v407_v61  ;;  %v1978_v3 = vmul.f32 100.0, %v1971_v62  ;;  %1578 = vlog2.f32 %v533_v55  ;;  %v546_v55 = vadd.f32 1.0, %v545_v33 }
  0xef   :  { %v432_v5 = vmul.f32 1.442695, %v406_v0  ;;  %v1982_v10 = vmul.f32 100.0, %v1975_v1  ;;  %v1429_v7 = vpop.f32.mrb[6].mxu1  ;;  %vm419_vm10 = vcmp.gt.f32.partialorder %v1960_v54, 20.0  ;;  %vm418_vm11 = vcmp.gt.f32.partialorder %v1966_v58, 20.0 }
  0xf0   :  { %1580 = vpow2.f32 %v434_v2  ;;  %v409_v12 = vmin.f32 %v1978_v3, 20.0  ;;  %v1987_v6 = vadd.f32 %v1429_v7, %v1908_v9  ;;  %v267_v13 = vpop.f32.mrb[7].mxu1  ;;  %v536_v9 = vmul.f32 -0.5, %v1947_v44 }
  0xf1   :  { %1582 = vpow2.f32 %v432_v5  ;;  %v408_v14 = vmin.f32 %v1982_v10, 20.0  ;;  %v1991_v15 = vadd.f32 %v1906_v8, %v267_v13  ;;  %v530_v8 = vand.u32 2147483647, %v1938_v39 }
  0xf2   :  { %v438_v18 = vmul.f32 1.442695, %v409_v12  ;;  %v1995_v20 = vmul.f32 100.0, %v1987_v6  ;;  %1584 = vlog2.f32 %v542_v4  ;;  %v537_v47 = vadd.f32 1.0, %v536_v9 }
  0xf3   :  { %v436_v22 = vmul.f32 1.442695, %v408_v14  ;;  %v1998_v23 = vmul.f32 100.0, %v1991_v15  ;;  %1586 = vlog2.f32 %v551_v11  ;;  %vm2013_vm4 = vcmp.lt.f32.partialorder %v530_v8, 0.0004427343 }
  0xf4   :  { %1588 = vpow2.f32 %v438_v18  ;;  %v411_v26 = vmin.f32 %v1995_v20, 20.0  ;;  %v2031_v4 = vmul.f32 %v1947_v44, %v537_v47  ;;  %v2038_v18 = vmul.f32 %v1963_v56, %v546_v55 }
  0xf5   :  { %1590 = vpow2.f32 %v436_v22  ;;  %v410_v29 = vmin.f32 %v1998_v23, 20.0  ;;  %v557_v22 = vand.u32 2147483647, %v1968_v60  ;;  %v2049_v8 = vmul.f32 %v1968_v60, %v555_v63 }
  0xf6   :  { %v2005_v34 = vpop.eup %1574  ;;  %v442_v35 = vmul.f32 1.442695, %v411_v26 }
  0xf7   :  { %v1577_v38 = vpop.eup %1576  ;;  %v440_v41 = vmul.f32 1.442695, %v410_v29  ;;  %v461_v46 = vadd.f32 1.0, %v2005_v34  ;;  %v464_v11 = vmul.f32 -0.5, %v2005_v34  ;;  %v467_v44 = vand.u32 2147483647, %v2005_v34 }
  0xf8   :  { %v1579_v48 = vpop.eup %1578  ;;  %1592 = vpow2.f32 %v442_v35  ;;  %v452_v50 = vadd.f32 1.0, %v1577_v38  ;;  %v455_v7 = vmul.f32 -0.5, %v1577_v38  ;;  %v458_v29 = vand.u32 2147483647, %v1577_v38 }
  0xf9   :  { %1594 = vpow2.f32 %v440_v41  ;;  %v2028_v2 = vmul.f32 0.6931472, %v1579_v48  ;;  %v465_v37 = vadd.f32 1.0, %v464_v11  ;;  %vm2069_vm8 = vcmp.lt.f32.partialorder %v467_v44, 0.0004427343 }
  0xfa   :  { %v2017_v57 = vpop.eup %1580  ;;  %1596 = vlog2.f32 %v452_v50  ;;  %v456_v36 = vadd.f32 1.0, %v455_v7  ;;  %vm2076_vm9 = vcmp.lt.f32.partialorder %v458_v29, 0.0004427343  ;;  %vm2111_vm15 = vcmp.lt.f32.partialorder %v557_v22, 0.0004427343 }
  0xfb   :  { %v2025_v0 = vpop.eup %1582  ;;  %1598 = vlog2.f32 %v461_v46  ;;  %v479_v39 = vadd.f32 1.0, %v2017_v57  ;;  %v482_v17 = vmul.f32 -0.5, %v2017_v57  ;;  %v485_v7 = vand.u32 2147483647, %v2017_v57 }
  0xfc   :  { %v1585_v5 = vpop.eup %1584  ;;  %v470_v12 = vadd.f32 1.0, %v2025_v0  ;;  %v473_v41 = vmul.f32 -0.5, %v2025_v0  ;;  %v476_v60 = vand.u32 2147483647, %v2025_v0  ;;  %v466_v44 = vmul.f32 %v2005_v34, %v465_v37 }
  0xfd   :  { %v1587_v14 = vpop.eup %1586  ;;  %1600 = vlog2.f32 %v479_v39  ;;  %v2058_v35 = vmul.f32 0.6931472, %v1585_v5  ;;  %v483_v47 = vadd.f32 1.0, %v482_v17  ;;  %v457_v17 = vmul.f32 %v1577_v38, %v456_v36 }
  0xfe   :  { %v2041_v9 = vpop.eup %1588  ;;  %1602 = vlog2.f32 %v470_v12  ;;  %v2063_v48 = vmul.f32 0.6931472, %v1587_v14  ;;  %vm2087_vm12 = vcmp.lt.f32.partialorder %v476_v60, 0.0004427343  ;;  %vm2095_vm13 = vcmp.lt.f32.partialorder %v485_v7, 0.0004427343 }
  0xff   :  { %v2051_v27 = vpop.eup %1590  ;;  %v497_v31 = vadd.f32 1.0, %v2041_v9  ;;  %v500_v63 = vmul.f32 -0.5, %v2041_v9  ;;  %v484_v13 = vmul.f32 %v2017_v57, %v483_v47  ;;  %v503_v38 = vand.u32 2147483647, %v2041_v9 }
 0x100   :  { %v488_v46 = vadd.f32 1.0, %v2051_v27  ;;  %v491_v11 = vmul.f32 -0.5, %v2051_v27  ;;  %v494_v60 = vand.u32 2147483647, %v2051_v27 }
 0x101   :  { %1604 = vlog2.f32 %v497_v31  ;;  %v474_v31 = vadd.f32 1.0, %v473_v41  ;;  %v501_v25 = vadd.f32 1.0, %v500_v63  ;;  %vm2121_vm0 = vcmp.lt.f32.partialorder %v503_v38, 0.0004427343 }
 0x102   :  { %v2065_v50 = vpop.eup %1592  ;;  %1606 = vlog2.f32 %v488_v46  ;;  %v492_v41 = vadd.f32 1.0, %v491_v11  ;;  %v591_v11 = vld [vmem:[%s2348_s5 + $0x30] sm:$0xff] }
 0x103   :  { %v2074_v39 = vpop.eup %1594  ;;  %v515_v12 = vadd.f32 1.0, %v2065_v50  ;;  %v518_v63 = vmul.f32 -0.5, %v2065_v50  ;;  %v475_v5 = vmul.f32 %v2025_v0, %v474_v31  ;;  %v502_v0 = vmul.f32 %v2041_v9, %v501_v25 }
 0x104   :  { %v1597_v14 = vpop.eup %1596  ;;  %v506_v46 = vadd.f32 1.0, %v2074_v39  ;;  %v509_v7 = vmul.f32 -0.5, %v2074_v39  ;;  %v493_v31 = vmul.f32 %v2051_v27, %v492_v41  ;;  %v512_v41 = vand.u32 2147483647, %v2074_v39 }
 0x105   :  { %v1599_v33 = vpop.eup %1598  ;;  %v454_v29 = vmul.f32 0.6931472, %v1597_v14  ;;  %1608 = vlog2.f32 %v515_v12 }
 0x106   :  { %v463_v28 = vmul.f32 0.6931472, %v1599_v33  ;;  %1610 = vlog2.f32 %v506_v46  ;;  %v510_v43 = vadd.f32 1.0, %v509_v7 }
 0x107   :  { %v1601_v34 = vpop.eup %1600  ;;  %v460_v36 = vsel %vm2076_vm9, %v457_v17, %v454_v29  ;;  %v2373_v17 = vand.u32 2147483647, %v1963_v56  ;;  %vm420_vm9 = vcmp.gt.f32.partialorder %v1982_v10, 20.0  ;;  %v2380_v10 = vsel %vm2013_vm4, %v2011_v51, %v2019_v59  ;;  %v592_v29 = vld [vmem:[%s2348_s5 + $0x38] sm:$0xff] }
 0x108   :  { %v1603_v14 = vpop.eup %1602  ;;  %v469_v57 = vsel %vm2069_vm8, %v466_v44, %v463_v28  ;;  %v561_v33 = vmul.f32 0.01, %v460_v36  ;;  %v481_v47 = vmul.f32 0.6931472, %v1601_v34  ;;  %v519_v34 = vadd.f32 1.0, %v518_v63  ;;  %v596_v44 = vld [vmem:[%s2348_s5 + $0x58] sm:$0xff] }
 0x109   :  { %v562_v12 = vmul.f32 0.01, %v469_v57  ;;  %v472_v46 = vmul.f32 0.6931472, %v1603_v14  ;;  %vm2107_vm14 = vcmp.lt.f32.partialorder %v2373_v17, 0.0004427343  ;;  %v559_v51 = vsel %vm2111_vm15, %v2049_v8, %v2063_v48 }
 0x10a   :  { %v573_v28 = vsel %vm416_vm7, %v1942_v42, %v561_v33  ;;  %v487_v55 = vsel %vm2095_vm13, %v484_v13, %v481_v47  ;;  %vm425_vm7 = vcmp.gt.f32.partialorder %v1922_v24, 20.0  ;;  %vm421_vm8 = vcmp.gt.f32.partialorder %v1978_v3, 20.0  ;;  %v2383_v8 = vld [vmem:[#allocation6_spill] sm:$0xff] }
 0x10b   :  { %v1605_v56 = vpop.eup %1604  ;;  %v574_v22 = vsel %vm417_vm6, %v1940_v40, %v562_v12  ;;  %v478_v45 = vsel %vm2087_vm12, %v475_v5, %v472_v46  ;;  %v564_v42 = vmul.f32 0.01, %v487_v55  ;;  %v521_v40 = vand.u32 2147483647, %v2065_v50  ;;  %v587_v24 = vld [vmem:[%s2348_s5 + $0x10] sm:$0xff]  ;;  %v590_v48 = vld [vmem:[%s2348_s5 + $0x28] sm:$0xff] }
 0x10c   :  { %v1607_v13 = vpop.eup %1606  ;;  %v1511_v25 = vpack.c.bf16 %v574_v22, %v573_v28  ;;  %v563_v9 = vmul.f32 0.01, %v478_v45  ;;  %v499_v38 = vmul.f32 0.6931472, %v1605_v56  ;;  %vm495_vm6 = vcmp.lt.f32.partialorder %v494_v60, 0.0004427343  ;;  %v617_v22 = vpop.permute.xlu1 %616 }
 0x10d   :  { %v576_v36 = vsel %vm419_vm10, %v1954_v49, %v564_v42  ;;  %v490_v37 = vmul.f32 0.6931472, %v1607_v13  ;;  %v511_v12 = vmul.f32 %v2074_v39, %v510_v43  ;;  %vm522_vm10 = vcmp.lt.f32.partialorder %v521_v40, 0.0004427343  ;;  %v593_v28 = vld [vmem:[%s2348_s5 + $0x40] sm:$0xff]  ;;  %v594_v55 = vld [vmem:[%s2348_s5 + $0x48] sm:$0xff]  ;;  %v612_v45 = vpop.permute.xlu0 %611 }
 0x10e   :  { %1512 = vmatprep.subr.bf16.mxu0 %v1511_v25  ;;  %v575_v26 = vsel %vm418_vm11, %v1957_v52, %v563_v9  ;;  %v505_v27 = vsel %vm2121_vm0, %v502_v0, %v499_v38  ;;  %v520_v52 = vmul.f32 %v2065_v50, %v519_v34  ;;  %vm513_vm11 = vcmp.lt.f32.partialorder %v512_v41, 0.0004427343  ;;  %v595_v0 = vld [vmem:[%s2348_s5 + $0x50] sm:$0xff]  ;;  %v839_v56 = vld [vmem:[%s2350_s7] sm:$0xff] }
 0x10f   :  { %v1609_v14 = vpop.eup %1608  ;;  %1514 = vmatpush3.bf16.msra.mxu0 %v1511_v25  ;;  %v1515_v49 = vpack.c.bf16 %v576_v36, %v575_v26  ;;  %v496_v54 = vsel %vm495_vm6, %v493_v31, %v490_v37  ;;  %v566_v57 = vmul.f32 0.01, %v505_v27  ;;  %v569_v5 = vmul.f32 0.01, %v2380_v10 }
 0x110   :  { %v1611_v33 = vpop.eup %1610  ;;  %v565_v47 = vmul.f32 0.01, %v496_v54  ;;  %v517_v63 = vmul.f32 0.6931472, %v1609_v14  ;;  %vm423_vm12 = vcmp.gt.f32.partialorder %v1995_v20, 20.0  ;;  %v550_v53 = vsel %vm2107_vm14, %v2038_v18, %v2058_v35  ;;  %v637_v42 = vpop.permute.xlu1 %636 }
 0x111   :  { %1516 = vmatprep.subr.bf16.mxu0 %v1515_v49  ;;  %v578_v58 = vsel %vm421_vm8, %v1971_v62, %v566_v57  ;;  %v508_v60 = vmul.f32 0.6931472, %v1611_v33  ;;  %v2381_v62 = vsel %vm2021_vm5, %v2031_v4, %v2028_v2  ;;  %vm422_vm4 = vcmp.gt.f32.partialorder %v1998_v23, 20.0  ;;  %v632_v31 = vpop.permute.xlu0 %631 }
 0x112   :  { %v577_v3 = vsel %vm420_vm9, %v1975_v1, %v565_v47  ;;  %v523_v46 = vsel %vm522_vm10, %v520_v52, %v517_v63  ;;  %v570_v39 = vmul.f32 0.01, %v2381_v62  ;;  %v581_v20 = vsel %vm424_vm2, %v1912_v16, %v569_v5 }
 0x113   :  { %1518 = vmatpush3.bf16.msra.mxu0 %v1515_v49  ;;  %v1519_v7 = vpack.c.bf16 %v578_v58, %v577_v3  ;;  %v514_v50 = vsel %vm513_vm11, %v511_v12, %v508_v60  ;;  %v568_v17 = vmul.f32 0.01, %v523_v46  ;;  %v571_v18 = vmul.f32 0.01, %v550_v53 }
 0x114   :  { %v567_v1 = vmul.f32 0.01, %v514_v50  ;;  %v582_v4 = vsel %vm425_vm7, %v1914_v19, %v570_v39  ;;  %v572_v35 = vmul.f32 0.01, %v559_v51  ;;  %vm426_vm5 = vcmp.gt.f32.partialorder %v1931_v30, 20.0  ;;  %v586_v19 = vld [vmem:[%s2348_s5 + $0x8] sm:$0xff]  ;;  %v657_v13 = vpop.permute.xlu1 %656 }
 0x115   :  { %1520 = vmatprep.subr.bf16.mxu0 %v1519_v7  ;;  %v580_v59 = vsel %vm423_vm12, %v1987_v6, %v568_v17  ;;  %vm427_vm13 = vcmp.gt.f32.partialorder %v1934_v32, 20.0  ;;  %v1527_v6 = vpack.c.bf16 %v582_v4, %v581_v20  ;;  %v588_v30 = vld [vmem:[%s2348_s5 + $0x18] sm:$0xff]  ;;  %v589_v32 = vld [vmem:[%s2348_s5 + $0x20] sm:$0xff]  ;;  %vm867_vm14 = vcmask 261120   ;;  %v652_v9 = vpop.permute.xlu0 %651 }
 0x116   :  { %v579_v61 = vsel %vm422_vm4, %v1991_v15, %v567_v1  ;;  %v2382_v15 = vld [vmem:[#allocation5_spill] sm:$0xff]  ;;  %v584_v21 = vsel %vm427_vm13, %v2383_v8, %v572_v35  ;;  %1480 = vmatprep.mubr.msk.f32.mxu1 %vm867_vm14, %v839_v56  ;;  %vm1671_vm10 = vmmov 0  }
 0x117   :  { %1522 = vmatpush3.bf16.msra.mxu0 %v1519_v7  ;;  %v1523_v2 = vpack.c.bf16 %v580_v59, %v579_v61  ;;  %v583_v23 = vsel %vm426_vm5, %v2382_v15, %v571_v18  ;;  %v841_v15 = vld [vmem:[%s2350_s7 + $0x10] sm:$0xff]  ;;  %v1029_v8 = vld [vmem:[%s2352_s9] sm:$0xff] }
 0x118   :  { %v1531_v16 = vpack.c.bf16 %v584_v21, %v583_v23  ;;  %v627_v37 = vpop.permute.xlu1 %626  ;;  %v842_v23 = vld [vmem:[%s2350_s7 + $0x18] sm:$0xff] }
 0x119   :  { %1524 = vmatprep.subr.bf16.mxu0 %v1523_v2  ;;  %v622_v43 = vpop.permute.xlu0 %621 }
 0x11b   :  { %1526 = vmatpush3.bf16.msra.mxu0 %v1523_v2 }
 0x11c   :  { %1528 = vmatprep.subr.bf16.mxu0 %v1527_v6  ;;  %v647_v57 = vpop.permute.xlu1 %646 }
 0x11d   :  { %v642_v63 = vpop.permute.xlu0 %641 }
 0x11f   :  { %1530 = vmatpush3.bf16.msra.mxu0 %v1527_v6  ;;  %v840_v6 = vld [vmem:[%s2350_s7 + $0x8] sm:$0xff] }
 0x120   :  { %1532 = vmatprep.subr.bf16.mxu0 %v1531_v16  ;;  %v667_v39 = vpop.permute.xlu1 %666 }
 0x121   :  { %v662_v51 = vpop.permute.xlu0 %661 }
 0x123   :  { %1534 = vmatpush3.bf16.msra.mxu0 %v1531_v16 }
 0x124   :  { %v855_v21 = vpop.permute.xlu1 %854 }
 0x125   :  { %v850_v16 = vpop.permute.xlu0 %849 }
 0x126   :  { %1455 = vmatmul.mubr.msk.f32.vlgmr.msra.gmra.mrb[0].mxu0 %vm669_vm3, %v586_v19 }
 0x127   :  { %1457 = vmatprep.mubr.msk.f32.mxu0 %vm669_vm3, %v587_v24 }
 0x12a   :  { %1458 = vmatmul.mubr.msk.f32.gmra.mrb[2].mxu0 %vm669_vm3, %v588_v30 }
 0x12b   :  { %1460 = vmatprep.mubr.msk.f32.mxu0 %vm669_vm3, %v589_v32 }
 0x12e   :  { %1461 = vmatmul.mubr.msk.f32.gmra.mrb[4].mxu0 %vm669_vm3, %v590_v48 }
 0x12f   :  { %1463 = vmatprep.mubr.msk.f32.mxu0 %vm669_vm3, %v591_v11  ;;  %v865_v11 = vpop.permute.xlu1 %864 }
 0x132   :  { %1464 = vmatmul.mubr.msk.f32.gmra.mrb[6].mxu0 %vm669_vm3, %v592_v29 }
 0x133   :  { %1466 = vmatprep.mubr.msk.f32.mxu0 %vm669_vm3, %v593_v28 }
 0x136   :  { %1467 = vmatmul.mubr.msk.f32.gmra.mrb[8].mxu0 %vm669_vm3, %v594_v55  ;;  %v860_v55 = vpop.permute.xlu0 %859 }
 0x137   :  { %1469 = vmatprep.mubr.msk.f32.mxu0 %vm669_vm3, %v595_v0 }
 0x13a   :  { %1470 = vmatmul.mubr.msk.f32.gmra.mrb[10].mxu0 %vm669_vm3, %v596_v44 }
 0x1f9   :  { %v1456_v25 = vpop.f32.mrb[0].mxu0 }
 0x1fa   :  { %v772_v38 = vpop.f32.mrb[1].mxu0  ;;  %v778_v26 = vadd.f32 %v1456_v25, %v617_v22 }
 0x1fb   :  { %v773_v14 = vadd.f32 %v772_v38, %v612_v45 }
 0x1fd   :  { %v1459_v34 = vpop.f32.mrb[2].mxu0 }
 0x1fe   :  { %v782_v36 = vpop.f32.mrb[3].mxu0  ;;  %v788_v52 = vadd.f32 %v1459_v34, %v627_v37 }
 0x1ff   :  { %v783_v12 = vadd.f32 %v782_v36, %v622_v43 }
 0x201   :  { %v1462_v40 = vpop.f32.mrb[4].mxu0 }
 0x202   :  { %v798_v27 = vadd.f32 %v1462_v40, %v637_v42  ;;  %v792_v41 = vpop.f32.mrb[5].mxu0 }
 0x203   :  { %v793_v49 = vadd.f32 %v792_v41, %v632_v31 }
 0x204   :  { %v832_v54 = vmul.f32 %v798_v27, %v778_v26 }
 0x205   :  { %v831_v33 = vmul.f32 %v793_v49, %v773_v14  ;;  %v1465_v47 = vpop.f32.mrb[6].mxu0 }
 0x206   :  { %v808_v58 = vadd.f32 %v1465_v47, %v647_v57  ;;  %v802_v60 = vpop.f32.mrb[7].mxu0 }
 0x207   :  { %v803_v3 = vadd.f32 %v802_v60, %v642_v63 }
 0x208   :  { %v834_v46 = vmul.f32 %v808_v58, %v788_v52 }
 0x209   :  { %v833_v10 = vmul.f32 %v803_v3, %v783_v12  ;;  %v1468_v5 = vpop.f32.mrb[8].mxu0 }
 0x20a   :  { %v818_v7 = vadd.f32 %v1468_v5, %v657_v13  ;;  %v812_v50 = vpop.f32.mrb[9].mxu0 }
 0x20b   :  { %v813_v17 = vadd.f32 %v812_v50, %v652_v9 }
 0x20c   :  { %v836_v62 = vadd.f32 %v832_v54, %v818_v7 }
 0x20d   :  { %v835_v1 = vadd.f32 %v831_v33, %v813_v17  ;;  %v1471_v53 = vpop.f32.mrb[10].mxu0 }
 0x20e   :  { %v828_v59 = vadd.f32 %v1471_v53, %v667_v39  ;;  %v822_v61 = vpop.f32.mrb[11].mxu0 }
 0x20f   :  { %v823_v20 = vadd.f32 %v822_v61, %v662_v51  ;;  %v1535_v2 = vpack.c.bf16 %v836_v62, %v835_v1 }
 0x210   :  { %v838_v4 = vadd.f32 %v834_v46, %v828_v59 }
 0x211   :  { %v837_v18 = vadd.f32 %v833_v10, %v823_v20  ;;  %1536 = vmatprep.subr.bf16.mxu1 %v1535_v2 }
 0x212   :  { %1538 = vmatpush3.bf16.msra.mxu1 %v1535_v2 }
 0x213   :  { %v1539_v35 = vpack.c.bf16 %v838_v4, %v837_v18 }
 0x215   :  { %1540 = vmatprep.subr.bf16.mxu1 %v1539_v35 }
 0x216   :  { %1542 = vmatpush3.bf16.msra.mxu1 %v1539_v35 }
 0x219   :  { %1481 = vmatmul.mubr.msk.f32.vlgmr.msra.gmra.mrb[8].mxu1 %vm867_vm14, %v840_v6 }
 0x21a   :  { %1483 = vmatprep.mubr.msk.f32.mxu1 %vm867_vm14, %v841_v15 }
 0x21d   :  { %1484 = vmatmul.mubr.msk.f32.gmra.mrb[10].mxu1 %vm867_vm14, %v842_v23 }
 0x21e   :  { %1494 = vmatprep.mubr.msk.f32.mxu1 %vm867_vm14, %v1029_v8 }
 0x2ec   :  { %v1482_v19 = vpop.f32.mrb[8].mxu1 }
 0x2ed   :  { %v2245_v24 = vadd.f32 %v1482_v19, %v855_v21  ;;  %v946_v30 = vpop.f32.mrb[9].mxu1 }
 0x2ee   :  { %v2247_v32 = vadd.f32 %v946_v30, %v850_v16 }
 0x2ef   :  { %v2250_v48 = vmul.f32 100.0, %v2245_v24 }
 0x2f0   :  { %v2253_v29 = vmul.f32 100.0, %v2247_v32  ;;  %v1485_v28 = vpop.f32.mrb[10].mxu1 }
 0x2f1   :  { %v970_v0 = vmin.f32 %v2250_v48, 20.0  ;;  %v2256_v44 = vadd.f32 %v1485_v28, %v865_v11  ;;  %v956_v56 = vpop.f32.mrb[11].mxu1  ;;  %vm974_vm0 = vcmp.gt.f32.partialorder %v2250_v48, 20.0  ;;  %v1031_v11 = vld [vmem:[%s2352_s9 + $0x10] sm:$0xff]  ;;  %v1670_v28 = vmov 0.0|0.0  }
 0x2f2   :  { %v969_v22 = vmin.f32 %v2253_v29, 20.0  ;;  %v2259_v45 = vadd.f32 %v956_v56, %v860_v55  ;;  %vm973_vm2 = vcmp.gt.f32.partialorder %v2253_v29, 20.0  ;;  %v1032_v29 = vld [vmem:[%s2352_s9 + $0x18] sm:$0xff]  ;;  %v1672_v55 = vmov 0.0  }
 0x2f3   :  { %v979_v42 = vmul.f32 1.442695, %v970_v0  ;;  %v2262_v31 = vmul.f32 100.0, %v2256_v44  ;;  %v1045_v0 = vpop.permute.xlu1 %1044 }
 0x2f4   :  { %v977_v13 = vmul.f32 1.442695, %v969_v22  ;;  %v2265_v25 = vmul.f32 100.0, %v2259_v45 }
 0x2f5   :  { %1612 = vpow2.f32 %v979_v42  ;;  %v972_v9 = vmin.f32 %v2262_v31, 20.0  ;;  %vm976_vm8 = vcmp.gt.f32.partialorder %v2262_v31, 20.0 }
 0x2f6   :  { %1614 = vpow2.f32 %v977_v13  ;;  %v971_v38 = vmin.f32 %v2265_v25, 20.0  ;;  %vm975_vm9 = vcmp.gt.f32.partialorder %v2265_v25, 20.0 }
 0x2f7   :  { %v983_v34 = vmul.f32 1.442695, %v972_v9  ;;  %v1055_v13 = vpop.permute.xlu1 %1054 }
 0x2f8   :  { %v981_v36 = vmul.f32 1.442695, %v971_v38 }
 0x2f9   :  { %1616 = vpow2.f32 %v983_v34 }
 0x2fa   :  { %1618 = vpow2.f32 %v981_v36 }
 0x2ff   :  { %v1613_v37 = vpop.eup %1612 }
 0x300   :  { %v1615_v43 = vpop.eup %1614  ;;  %v994_v40 = vadd.f32 1.0, %v1613_v37  ;;  %v997_v49 = vmul.f32 -0.5, %v1613_v37  ;;  %v1000_v47 = vand.u32 2147483647, %v1613_v37 }
 0x301   :  { %v985_v26 = vadd.f32 1.0, %v1615_v43  ;;  %v988_v57 = vmul.f32 -0.5, %v1615_v43  ;;  %v991_v60 = vand.u32 2147483647, %v1615_v43 }
 0x302   :  { %1620 = vlog2.f32 %v994_v40  ;;  %v998_v33 = vadd.f32 1.0, %v997_v49  ;;  %vm1001_vm3 = vcmp.lt.f32.partialorder %v1000_v47, 0.0004427343 }
 0x303   :  { %v1617_v27 = vpop.eup %1616  ;;  %1622 = vlog2.f32 %v985_v26  ;;  %v989_v52 = vadd.f32 1.0, %v988_v57  ;;  %vm992_vm15 = vcmp.lt.f32.partialorder %v991_v60, 0.0004427343 }
 0x304   :  { %v1619_v41 = vpop.eup %1618  ;;  %v1012_v14 = vadd.f32 1.0, %v1617_v27  ;;  %v1015_v63 = vmul.f32 -0.5, %v1617_v27  ;;  %v999_v10 = vmul.f32 %v1613_v37, %v998_v33  ;;  %v1018_v62 = vand.u32 2147483647, %v1617_v27 }
 0x305   :  { %v1003_v54 = vadd.f32 1.0, %v1619_v41  ;;  %v1006_v58 = vmul.f32 -0.5, %v1619_v41  ;;  %v990_v50 = vmul.f32 %v1615_v43, %v989_v52  ;;  %v1009_v1 = vand.u32 2147483647, %v1619_v41 }
 0x306   :  { %1624 = vlog2.f32 %v1012_v14  ;;  %v1016_v5 = vadd.f32 1.0, %v1015_v63  ;;  %vm1019_vm7 = vcmp.lt.f32.partialorder %v1018_v62, 0.0004427343 }
 0x307   :  { %1626 = vlog2.f32 %v1003_v54  ;;  %v1007_v17 = vadd.f32 1.0, %v1006_v58  ;;  %vm1010_vm6 = vcmp.lt.f32.partialorder %v1009_v1, 0.0004427343 }
 0x308   :  { %v1017_v4 = vmul.f32 %v1617_v27, %v1016_v5 }
 0x309   :  { %v1008_v6 = vmul.f32 %v1619_v41, %v1007_v17 }
 0x30c   :  { %v1621_v12 = vpop.eup %1620 }
 0x30d   :  { %v1623_v3 = vpop.eup %1622  ;;  %v996_v46 = vmul.f32 0.6931472, %v1621_v12 }
 0x30e   :  { %v987_v7 = vmul.f32 0.6931472, %v1623_v3 }
 0x30f   :  { %v1002_v39 = vsel %vm1001_vm3, %v999_v10, %v996_v46 }
 0x310   :  { %v1625_v53 = vpop.eup %1624  ;;  %v993_v51 = vsel %vm992_vm15, %v990_v50, %v987_v7  ;;  %v1022_v59 = vmul.f32 0.01, %v1002_v39 }
 0x311   :  { %v1627_v61 = vpop.eup %1626  ;;  %v1021_v20 = vmul.f32 0.01, %v993_v51  ;;  %v1014_v2 = vmul.f32 0.6931472, %v1625_v53 }
 0x312   :  { %v1026_v18 = vsel %vm974_vm0, %v2245_v24, %v1022_v59  ;;  %v1005_v35 = vmul.f32 0.6931472, %v1627_v61 }
 0x313   :  { %v1025_v15 = vsel %vm973_vm2, %v2247_v32, %v1021_v20  ;;  %v1020_v23 = vsel %vm1019_vm7, %v1017_v4, %v1014_v2  ;;  %v1030_v32 = vld [vmem:[%s2352_s9 + $0x8] sm:$0xff] }
 0x314   :  { %v1543_v8 = vpack.c.bf16 %v1026_v18, %v1025_v15  ;;  %v1011_v21 = vsel %vm1010_vm6, %v1008_v6, %v1005_v35  ;;  %v1024_v16 = vmul.f32 0.01, %v1020_v23 }
 0x315   :  { %v1023_v19 = vmul.f32 0.01, %v1011_v21 }
 0x316   :  { %1544 = vmatprep.subr.bf16.mxu1 %v1543_v8  ;;  %v1028_v30 = vsel %vm976_vm8, %v2256_v44, %v1024_v16  ;;  %v1040_v44 = vpop.permute.xlu0 %1039 }
 0x317   :  { %1546 = vmatpush3.bf16.msra.mxu1 %v1543_v8  ;;  %v1027_v24 = vsel %vm975_vm9, %v2259_v45, %v1023_v19 }
 0x318   :  { %v1547_v48 = vpack.c.bf16 %v1028_v30, %v1027_v24 }
 0x31a   :  { %1548 = vmatprep.subr.bf16.mxu1 %v1547_v48  ;;  %v1050_v38 = vpop.permute.xlu0 %1049 }
 0x31b   :  { %1550 = vmatpush3.bf16.msra.mxu1 %v1547_v48 }
 0x31c   :  { %1551 = vmatprep.subr.bf16.mxu1 %v1670_v28 }
 0x31e   :  { %1495 = vmatmul.mubr.msk.f32.vlgmr.msra.gmra.mrb[12].mxu1 %vm867_vm14, %v1030_v32 }
 0x31f   :  { %1497 = vmatprep.mubr.msk.f32.mxu1 %vm867_vm14, %v1031_v11 }
 0x322   :  { %1498 = vmatmul.mubr.msk.f32.gmra.mrb[14].mxu1 %vm867_vm14, %v1032_v29 }
 0x323   :  { %1508 = vmatprep.mubr.msk.f32.mxu1 %vm1671_vm10, %v1672_v55 }
 0x3f1   :  { %v1496_v56 = vpop.f32.mrb[12].mxu1 }
 0x3f2   :  { %v2290_v22 = vadd.f32 %v1496_v56, %v1045_v0  ;;  %v1135_v45 = vpop.f32.mrb[13].mxu1 }
 0x3f3   :  { %v2292_v42 = vadd.f32 %v1135_v45, %v1040_v44 }
 0x3f4   :  { %v2295_v31 = vmul.f32 100.0, %v2290_v22 }
 0x3f5   :  { %v2298_v25 = vmul.f32 100.0, %v2292_v42  ;;  %v1499_v9 = vpop.f32.mrb[14].mxu1 }
 0x3f6   :  { %v1159_v34 = vmin.f32 %v2295_v31, 20.0  ;;  %v2301_v36 = vadd.f32 %v1499_v9, %v1055_v13  ;;  %v1145_v37 = vpop.f32.mrb[15].mxu1  ;;  %vm1163_vm4 = vcmp.gt.f32.partialorder %v2295_v31, 20.0 }
 0x3f7   :  { %v1158_v43 = vmin.f32 %v2298_v25, 20.0  ;;  %v2304_v40 = vadd.f32 %v1145_v37, %v1050_v38  ;;  %vm1162_vm5 = vcmp.gt.f32.partialorder %v2298_v25, 20.0  ;;  %v1223_v25 = vpop.permute.xlu0 %1222  ;;  %v1644_v37 = vld [vmem:[%s2343_s0] sm:$0xff] }
 0x3f8   :  { %v1168_v26 = vmul.f32 1.442695, %v1159_v34  ;;  %v2307_v27 = vmul.f32 100.0, %v2301_v36 }
 0x3f9   :  { %v1166_v41 = vmul.f32 1.442695, %v1158_v43  ;;  %v2310_v14 = vmul.f32 100.0, %v2304_v40 }
 0x3fa   :  { %1628 = vpow2.f32 %v1168_v26  ;;  %v1161_v49 = vmin.f32 %v2307_v27, 20.0  ;;  %vm1165_vm15 = vcmp.gt.f32.partialorder %v2307_v27, 20.0 }
 0x3fb   :  { %1630 = vpow2.f32 %v1166_v41  ;;  %v1160_v54 = vmin.f32 %v2310_v14, 20.0  ;;  %vm1164_vm0 = vcmp.gt.f32.partialorder %v2310_v14, 20.0 }
 0x3fc   :  { %v1172_v57 = vmul.f32 1.442695, %v1161_v49 }
 0x3fd   :  { %v1170_v33 = vmul.f32 1.442695, %v1160_v54 }
 0x3fe   :  { %1632 = vpow2.f32 %v1172_v57 }
 0x3ff   :  { %1634 = vpow2.f32 %v1170_v33 }
 0x404   :  { %v1629_v47 = vpop.eup %1628 }
 0x405   :  { %v1631_v63 = vpop.eup %1630  ;;  %v1183_v52 = vadd.f32 1.0, %v1629_v47  ;;  %v1186_v46 = vmul.f32 -0.5, %v1629_v47  ;;  %v1189_v50 = vand.u32 2147483647, %v1629_v47 }
 0x406   :  { %v1174_v58 = vadd.f32 1.0, %v1631_v63  ;;  %v1177_v5 = vmul.f32 -0.5, %v1631_v63  ;;  %v1180_v1 = vand.u32 2147483647, %v1631_v63 }
 0x407   :  { %1636 = vlog2.f32 %v1183_v52  ;;  %v1187_v7 = vadd.f32 1.0, %v1186_v46  ;;  %vm1190_vm11 = vcmp.lt.f32.partialorder %v1189_v50, 0.0004427343 }
 0x408   :  { %v1633_v60 = vpop.eup %1632  ;;  %1638 = vlog2.f32 %v1174_v58  ;;  %v1178_v62 = vadd.f32 1.0, %v1177_v5  ;;  %vm1181_vm12 = vcmp.lt.f32.partialorder %v1180_v1, 0.0004427343 }
 0x409   :  { %v1635_v12 = vpop.eup %1634  ;;  %v1201_v3 = vadd.f32 1.0, %v1633_v60  ;;  %v1204_v17 = vmul.f32 -0.5, %v1633_v60  ;;  %v1188_v61 = vmul.f32 %v1629_v47, %v1187_v7  ;;  %v1207_v18 = vand.u32 2147483647, %v1633_v60 }
 0x40a   :  { %v1192_v10 = vadd.f32 1.0, %v1635_v12  ;;  %v1195_v39 = vmul.f32 -0.5, %v1635_v12  ;;  %v1179_v4 = vmul.f32 %v1631_v63, %v1178_v62  ;;  %v1198_v15 = vand.u32 2147483647, %v1635_v12 }
 0x40b   :  { %1640 = vlog2.f32 %v1201_v3  ;;  %v1205_v20 = vadd.f32 1.0, %v1204_v17  ;;  %vm1208_vm13 = vcmp.lt.f32.partialorder %v1207_v18, 0.0004427343 }
 0x40c   :  { %1642 = vlog2.f32 %v1192_v10  ;;  %v1196_v35 = vadd.f32 1.0, %v1195_v39  ;;  %vm1199_vm3 = vcmp.lt.f32.partialorder %v1198_v15, 0.0004427343 }
 0x40d   :  { %v1206_v24 = vmul.f32 %v1633_v60, %v1205_v20 }
 0x40e   :  { %v1197_v11 = vmul.f32 %v1635_v12, %v1196_v35 }
 0x411   :  { %v1637_v53 = vpop.eup %1636 }
 0x412   :  { %v1639_v51 = vpop.eup %1638  ;;  %v1185_v59 = vmul.f32 0.6931472, %v1637_v53 }
 0x413   :  { %v1176_v2 = vmul.f32 0.6931472, %v1639_v51 }
 0x414   :  { %v1191_v6 = vsel %vm1190_vm11, %v1188_v61, %v1185_v59 }
 0x415   :  { %v1641_v23 = vpop.eup %1640  ;;  %v1211_v8 = vmul.f32 0.01, %v1191_v6  ;;  %v1182_v21 = vsel %vm1181_vm12, %v1179_v4, %v1176_v2 }
 0x416   :  { %v1643_v16 = vpop.eup %1642  ;;  %v1210_v19 = vmul.f32 0.01, %v1182_v21  ;;  %v1203_v30 = vmul.f32 0.6931472, %v1641_v23 }
 0x417   :  { %v1215_v48 = vsel %vm1163_vm4, %v2290_v22, %v1211_v8  ;;  %v1194_v32 = vmul.f32 0.6931472, %v1643_v16 }
 0x418   :  { %v1214_v29 = vsel %vm1162_vm5, %v2292_v42, %v1210_v19  ;;  %v1209_v55 = vsel %vm1208_vm13, %v1206_v24, %v1203_v30  ;;  %v1218_v42 = vld [vmem:[%s2354_s11] sm:$0xf]  ;;  %s1673_s11 = smov [#allocation2]  }
 0x419   :  { %v1552_v0 = vpack.c.bf16 %v1215_v48, %v1214_v29  ;;  %v1213_v44 = vmul.f32 0.01, %v1209_v55  ;;  %v1200_v56 = vsel %vm1199_vm3, %v1197_v11, %v1194_v32  ;;  %s1320_s17 = sshll.u32 %s1673_s11, 4  ;;  %s1321_s17 = int_to_ptr.vmem [resolvable:$true] %s1320_s17 }
 0x41a   :  { %v1212_v45 = vmul.f32 0.01, %v1200_v56  ;;  %s1645_s18 = scalar_lea.vmem %s1321_s17, 16  ;;  %s1649_s19 = scalar_lea.vmem %s1321_s17, 32 }
 0x41b   :  { %v1217_v31 = vsel %vm1165_vm15, %v2301_v36, %v1213_v44  ;;  %1553 = vmatpush3.bf16.msra.mxu1 %v1552_v0  ;;  %p1646_p0 = scmp.ne.s32.totalorder %s1321_s17, %s1645_s18  ;;  %p1650_p1 = scmp.lt.s32.totalorder %s1321_s17, %s1321_s17 }
 0x41c   :  { %v1216_v22 = vsel %vm1164_vm0, %v2304_v40, %v1212_v45  ;;  %1554 = vmatprep.subr.bf16.mxu1 %v1670_v28  ;;  %p1651_p2 = scmp.lt.s32.totalorder %s1649_s19, %s1645_s18 }
 0x41d   :  { %v1555_v13 = vpack.c.bf16 %v1217_v31, %v1216_v22 }
 0x41e   :  { %p1652_p3 = por %p1651_p2, %p1650_p1 }
 0x41f   :  { %1556 = vmatpush3.bf16.msra.mxu1 %v1555_v13 }
 0x420   :  { %p1653_p4 = pnand %p1652_p3, %p1646_p0 }
 0x422   :  { %1509 = vmatmul.mubr.msk.f32.vlgmr.msra.gmra.mrb[16].mxu1 %vm867_vm14, %v1218_v42 }
 0x4f5   :  { %v1294_v9 = vpop.f32.mrb[16].mxu1 }
 0x4f6   :  { %v1295_v38 = vadd.f32 %v1294_v9, %v1223_v25  ;;  %v1510_v34 = vpop.f32.mrb[17].mxu1 }
 0x4f8   :  { %v1299_v36 = vrot.slane %v1295_v38, 4 }
 0x4fa   :  { %v1301_v43 = vsub.f32 %v1644_v37, %v1299_v36 }
 0x4fc   :  { %v1302_v40 = vmul.f32 %v1301_v43, %v1301_v43 }
 0x4fe   :  { %v1304_v28 = vrot.slane %v1302_v40, 4 }
 0x500   :  { %v1306_v26 = vsel %vm85_vm1, %v1304_v28, 0.0 }
 0x501   :  { %v1307_v27 = vrot.slane %v1306_v26, 4 }
 0x503   :  { %v1308_v41 = vadd.f32 %v1307_v27, %v1306_v26 }
 0x505   :  { %v1309_v14 = vrot.slane %v1308_v41, 2 }
 0x507   :  { %v1310_v49 = vadd.f32 %v1309_v14, %v1308_v41 }
 0x509   :  { %v1311_v54 = vrot.slane %v1310_v49, 1 }
 0x50b   :  { %v1312_v57 = vadd.f32 %v1311_v54, %v1310_v49 }
 0x50d   :  { %1313 = vst [vmem:[#allocation2] sm:$0x1] %v1312_v57 }
 0x50e   :  { %1656 = shalt.err (!%p1653_p4)
}
 0x50f   :  { %s1657_s21 = scalar_lea.hbm %s2356_s13, 16 }
 0x510   :  { %p1658_p5 = scmp.ne.s32.totalorder %s2356_s13, %s1657_s21  ;;  %p1661_p6 = scmp.lt.u32.totalorder %s1657_s21, %s2356_s13 }
 0x512   :  { %p1663_p7 = pnand %p1661_p6, %p1658_p5 }
 0x514   :  { %1666 = shalt.err (!%p1663_p7)
}
 0x515   :  { %1323 = dma.vmem_to_hbm [thread:$0]  %s1321_s17, 16, %s2356_s13, [#allocation3]  }
 0x516   :  { %1667 = dma.done.wait [#allocation3], 16  }
 0x517   :  { %1668 = vsyncadd [#allocation3], 4294967280 }
 0x518   :  { %1327 = vsyncpa [#allocation3], 1 }

</bundles_post_ra>
